<compile_context>
chip_gen: v7x
topology: tpu7x:2x2x1
jax: 0.10.0
libtpu: 0.0.40
codegen_flags: <defaults>
</compile_context>

<pallas_src>
import jax
import jax.numpy as jnp
from jax.experimental import pallas as pl
from jax.experimental.pallas import tpu as pltpu

_LANE = 128
_SUBLANE = 8
_OUT_CHUNK = 512  # lanes of the decoder-L2 f32 result materialized at once


def _round_up(n, m):
    return ((n + m - 1) // m) * m


def _pad2(a, rows, cols):
    r, c = a.shape
    if r == rows and c == cols:
        return a
    return jnp.pad(a, ((0, rows - r), (0, cols - c)))


# --------------------------------------------------------------------------
# Kernel: full 4-layer MLP on one (tile_b, input_dim) batch tile.
# --------------------------------------------------------------------------
def _ae_kernel(x_ref, w1_ref, b1_ref, w2_ref, b2_ref, w3_ref, b3_ref,
               w4_ref, b4_ref, o_ref):
    cdt = w1_ref.dtype                      # MXU operand dtype (bf16 or f32)
    x = x_ref[...].astype(cdt)              # cast f32 HBM input in VMEM

    # encoder L1: Linear + ReLU   (f32 accumulate, f32 bias/ReLU epilogue)
    h = jnp.dot(x, w1_ref[...], preferred_element_type=jnp.float32) + b1_ref[...]
    h = jnp.maximum(h, 0.0)
    # encoder L2: Linear + ReLU
    h = jnp.dot(h.astype(cdt), w2_ref[...], preferred_element_type=jnp.float32) + b2_ref[...]
    h = jnp.maximum(h, 0.0)
    # decoder L1: Linear + ReLU
    h = jnp.dot(h.astype(cdt), w3_ref[...], preferred_element_type=jnp.float32) + b3_ref[...]
    h = jnp.maximum(h, 0.0).astype(cdt)

    # decoder L2: Linear (no activation), chunked over the output-feature dim
    # so the live f32 result stays <= (tile_b, _OUT_CHUNK).
    n_out = o_ref.shape[-1]
    for start in range(0, n_out, _OUT_CHUNK):
        stop = min(start + _OUT_CHUNK, n_out)
        out = jnp.dot(h, w4_ref[:, start:stop],
                      preferred_element_type=jnp.float32) + b4_ref[:, start:stop]
        o_ref[:, start:stop] = out.astype(o_ref.dtype)


# --------------------------------------------------------------------------
# One-time weight preparation (pad internal dims to 128 multiples + cast).
# Call once and reuse across forward calls.
# --------------------------------------------------------------------------
def prepare_params(params, compute_dtype=jnp.bfloat16):
    W1, b1 = params["W1"], params["b1"]
    W2, b2 = params["W2"], params["b2"]
    W3, b3 = params["W3"], params["b3"]
    W4, b4 = params["W4"], params["b4"]
    input_dim = W1.shape[0]
    h1_p = _round_up(W1.shape[1], _LANE)    # 2*encoding_dim, padded
    enc_p = _round_up(W2.shape[1], _LANE)   # encoding_dim, padded
    return {
        # K of W1 and N of W4 stay at the real input_dim (x / out are unpadded).
        "W1": _pad2(W1, input_dim, h1_p).astype(compute_dtype),
        "b1": _pad2(b1, 1, h1_p).astype(jnp.float32),
        "W2": _pad2(W2, h1_p, enc_p).astype(compute_dtype),
        "b2": _pad2(b2, 1, enc_p).astype(jnp.float32),
        "W3": _pad2(W3, enc_p, h1_p).astype(compute_dtype),
        "b3": _pad2(b3, 1, h1_p).astype(jnp.float32),
        "W4": _pad2(W4, h1_p, input_dim).astype(compute_dtype),
        "b4": _pad2(b4, 1, input_dim).astype(jnp.float32),
    }


# --------------------------------------------------------------------------
# Forward wrapper.
# --------------------------------------------------------------------------
def imputation_autoencoder_forward(x, prepared, *, tile_b=512, out_dtype=None,
                                    vmem_budget_bytes=40 * 1024 * 1024,
                                    single_buffer_weights=True):
    """x: (B, input_dim).  prepared: output of prepare_params()."""
    B, d_in = x.shape
    out_dtype = x.dtype if out_dtype is None else out_dtype

    W1p, b1p = prepared["W1"], prepared["b1"]
    W2p, b2p = prepared["W2"], prepared["b2"]
    W3p, b3p = prepared["W3"], prepared["b3"]
    W4p, b4p = prepared["W4"], prepared["b4"]
    assert W1p.shape[0] == d_in and W4p.shape[1] == d_in
    h1_p, enc_p = W1p.shape[1], W2p.shape[1]

    cbytes = jnp.dtype(W1p.dtype).itemsize
    xbytes = jnp.dtype(x.dtype).itemsize
    obytes = jnp.dtype(out_dtype).itemsize
    weight_bytes = int((W1p.size + W2p.size + W3p.size + W4p.size) * cbytes
                       + (b1p.size + b2p.size + b3p.size + b4p.size) * 4)

    # --- batch-tile sizing against an explicit VMEM budget -----------------
    out_chunk = min(_OUT_CHUNK, d_in)
    per_row = (2 * d_in * xbytes            # double-buffered x tile
               + 2 * d_in * obytes          # double-buffered out tile
               + h1_p * (4 + cbytes)        # f32 activation + compute-dtype cast
               + enc_p * (4 + cbytes)
               + out_chunk * 4)             # live f32 decoder-L2 chunk
    avail = max(vmem_budget_bytes - weight_bytes, 0)
    tile_budget = max(((avail // per_row) // _SUBLANE) * _SUBLANE, _SUBLANE)
    # keep >= 2 grid steps when the batch allows (megacore on multi-TC chips)
    half_b = _round_up(pl.cdiv(B, 2), _SUBLANE)
    tile_b_eff = min(_round_up(max(tile_b, 1), _SUBLANE), tile_budget, half_b)
    grid = (pl.cdiv(B, tile_b_eff),)

    footprint = weight_bytes + tile_b_eff * per_row
    vmem_limit = int(min(max(footprint * 5 // 4 + (4 << 20), 32 << 20), 64 << 20))

    cost = pl.CostEstimate(
        flops=2 * B * (d_in * h1_p + h1_p * enc_p + enc_p * h1_p + h1_p * d_in),
        transcendentals=0,
        bytes_accessed=B * d_in * (xbytes + obytes) + weight_bytes,
    )

    weights = (W1p, b1p, W2p, b2p, W3p, b3p, W4p, b4p)

    def _build(single_buffer):
        def wspec(shape):
            if single_buffer:
                # Constant block across the whole grid -> one VMEM copy is enough.
                return pl.BlockSpec(shape, lambda i: (0, 0),
                                    pipeline_mode=pl.Buffered(1))
            return pl.BlockSpec(shape, lambda i: (0, 0))

        in_specs = [pl.BlockSpec((tile_b_eff, d_in), lambda i: (i, 0))]  # x tile
        in_specs += [wspec(a.shape) for a in weights]

        return pl.pallas_call(
            _ae_kernel,
            out_shape=jax.ShapeDtypeStruct((B, d_in), out_dtype),
            grid_spec=pltpu.PrefetchScalarGridSpec(
                num_scalar_prefetch=0,
                grid=grid,
                in_specs=in_specs,
                out_specs=pl.BlockSpec((tile_b_eff, d_in), lambda i: (i, 0)),
            ),
            compiler_params=pltpu.CompilerParams(
                dimension_semantics=("parallel",),
                vmem_limit_bytes=vmem_limit),
            cost_estimate=cost,
        )

    args = (x,) + weights
    if single_buffer_weights:
        try:
            out = _build(True)(*args)
            return jax.block_until_ready(out)
        except Exception:
            # Fallback: default (double-buffered) weight specs.
            pass
    return _build(False)(*args)


# --------------------------------------------------------------------------
# Parameter init mimicking PyTorch nn.Linear default (uniform +-1/sqrt(fan_in))
# and a pure-JAX reference forward for validation.
# --------------------------------------------------------------------------
def init_params(key, input_dim, encoding_dim=64, dtype=jnp.float32):
    dims = [
        (input_dim, encoding_dim * 2),     # encoder L1
        (encoding_dim * 2, encoding_dim),  # encoder L2
        (encoding_dim, encoding_dim * 2),  # decoder L1
        (encoding_dim * 2, input_dim),     # decoder L2
    ]
    params = {}
    keys = jax.random.split(key, 2 * len(dims))
    for li, (fan_in, fan_out) in enumerate(dims):
        bound = 1.0 / jnp.sqrt(fan_in)
        W = jax.random.uniform(keys[2 * li], (fan_in, fan_out),
                               minval=-bound, maxval=bound, dtype=dtype)
        b = jax.random.uniform(keys[2 * li + 1], (1, fan_out),
                               minval=-bound, maxval=bound, dtype=dtype)
        params[f"W{li + 1}"] = W
        params[f"b{li + 1}"] = b
    return params


def _reference_forward(x, p):
    h = jnp.maximum(x @ p["W1"] + p["b1"], 0.0)
    h = jnp.maximum(h @ p["W2"] + p["b2"], 0.0)
    h = jnp.maximum(h @ p["W3"] + p["b3"], 0.0)
    return h @ p["W4"] + p["b4"]


if __name__ == "__main__":
    key = jax.random.PRNGKey(0)
    k_x, k_p, k_x2 = jax.random.split(key, 3)

    input_dim = 32
    encoding_dim = 64
    batch = 8

    x = jax.random.normal(k_x, (batch, input_dim), dtype=jnp.float32)
    params = init_params(k_p, input_dim, encoding_dim)
    ref = _reference_forward(x, params)

    # 1) f32 operand path: tight check against the f32 reference.
    prep_f32 = prepare_params(params, compute_dtype=jnp.float32)
    out_f32 = imputation_autoencoder_forward(x, prep_f32)
    out_f32 = jax.block_until_ready(out_f32)
    assert out_f32.shape == (batch, input_dim)
    assert jnp.allclose(out_f32, ref, atol=1e-3, rtol=1e-3)

    # 2) Production path: bf16 MXU operands, f32 accumulate (relaxed tolerance).
    prep_bf16 = prepare_params(params)  # prepared once, reused below
    out_bf16 = imputation_autoencoder_forward(x, prep_bf16)
    out_bf16 = jax.block_until_ready(out_bf16)
    assert out_bf16.shape == (batch, input_dim)
    assert jnp.allclose(out_bf16, ref, atol=5e-2, rtol=5e-2)

    # 3) Non-tile-multiple batch: multi-step grid + ragged (masked) last tile.
    batch2 = 300
    x2 = jax.random.normal(k_x2, (batch2, input_dim), dtype=jnp.float32)
    ref2 = _reference_forward(x2, params)
    out2 = imputation_autoencoder_forward(x2, prep_bf16, tile_b=128)
    out2 = jax.block_until_ready(out2)
    assert out2.shape == (batch2, input_dim)
    assert jnp.allclose(out2, ref2, atol=5e-2, rtol=5e-2)

    print("KERNEL_OK")
</pallas_src>

<mosaic_0001>
module attributes {stable_mosaic.version = 11 : i64} {
  func.func @_ae_kernel(%arg0: i32, %arg1: memref<8x32xf32, #tpu.memory_space<vmem>>, %arg2: memref<32x128xf32, #tpu.memory_space<vmem>>, %arg3: memref<1x128xf32, #tpu.memory_space<vmem>>, %arg4: memref<128x128xf32, #tpu.memory_space<vmem>>, %arg5: memref<1x128xf32, #tpu.memory_space<vmem>>, %arg6: memref<128x128xf32, #tpu.memory_space<vmem>>, %arg7: memref<1x128xf32, #tpu.memory_space<vmem>>, %arg8: memref<128x32xf32, #tpu.memory_space<vmem>>, %arg9: memref<1x32xf32, #tpu.memory_space<vmem>>, %arg10: memref<8x32xf32, #tpu.memory_space<vmem>>) attributes {dimension_semantics = [#tpu.dimension_semantics<parallel>], iteration_bounds = array<i64: 1>, scalar_prefetch = 0 : i64, scratch_operands = 0 : i64, tpu.core_type = #tpu.core_type<tc>, window_params = [{transform_indices = @transform_0, window_bounds = array<i64: 8, 32>}, {pipeline_mode = #tpu.pipeline_mode<synchronous>, transform_indices = @transform_1, window_bounds = array<i64: 32, 128>}, {pipeline_mode = #tpu.pipeline_mode<synchronous>, transform_indices = @transform_2, window_bounds = array<i64: 1, 128>}, {pipeline_mode = #tpu.pipeline_mode<synchronous>, transform_indices = @transform_3, window_bounds = array<i64: 128, 128>}, {pipeline_mode = #tpu.pipeline_mode<synchronous>, transform_indices = @transform_4, window_bounds = array<i64: 1, 128>}, {pipeline_mode = #tpu.pipeline_mode<synchronous>, transform_indices = @transform_5, window_bounds = array<i64: 128, 128>}, {pipeline_mode = #tpu.pipeline_mode<synchronous>, transform_indices = @transform_6, window_bounds = array<i64: 1, 128>}, {pipeline_mode = #tpu.pipeline_mode<synchronous>, transform_indices = @transform_7, window_bounds = array<i64: 128, 32>}, {pipeline_mode = #tpu.pipeline_mode<synchronous>, transform_indices = @transform_8, window_bounds = array<i64: 1, 32>}, {transform_indices = @transform_9, window_bounds = array<i64: 8, 32>}]} {
    %c0 = arith.constant 0 : index
    %c0_0 = arith.constant 0 : index
    %0 = vector.load %arg1[%c0, %c0_0] : memref<8x32xf32, #tpu.memory_space<vmem>>, vector<8x32xf32>
    %c0_1 = arith.constant 0 : index
    %c0_2 = arith.constant 0 : index
    %1 = vector.load %arg2[%c0_1, %c0_2] : memref<32x128xf32, #tpu.memory_space<vmem>>, vector<32x128xf32>
    %cst = arith.constant dense<0.000000e+00> : vector<8x128xf32>
    %2 = tpu.matmul %0, %1, %cst {dimension_numbers = #tpu.dot_dimension_numbers<[1], [0], [0], [1], [0, 0, 1, 1], [], []>} : vector<8x32xf32>, vector<32x128xf32>, vector<8x128xf32> -> vector<8x128xf32>
    %c0_3 = arith.constant 0 : index
    %c0_4 = arith.constant 0 : index
    %3 = vector.load %arg3[%c0_3, %c0_4] : memref<1x128xf32, #tpu.memory_space<vmem>>, vector<1x128xf32>
    %4 = vector.broadcast %3 : vector<1x128xf32> to vector<8x128xf32>
    %5 = arith.addf %2, %4 : vector<8x128xf32>
    %cst_5 = arith.constant 0.000000e+00 : f32
    %6 = vector.broadcast %cst_5 : f32 to vector<8x128xf32>
    %7 = arith.maximumf %5, %6 : vector<8x128xf32>
    %c0_6 = arith.constant 0 : index
    %c0_7 = arith.constant 0 : index
    %8 = vector.load %arg4[%c0_6, %c0_7] : memref<128x128xf32, #tpu.memory_space<vmem>>, vector<128x128xf32>
    %cst_8 = arith.constant dense<0.000000e+00> : vector<8x128xf32>
    %9 = tpu.matmul %7, %8, %cst_8 {dimension_numbers = #tpu.dot_dimension_numbers<[1], [0], [0], [1], [0, 0, 1, 1], [], []>} : vector<8x128xf32>, vector<128x128xf32>, vector<8x128xf32> -> vector<8x128xf32>
    %c0_9 = arith.constant 0 : index
    %c0_10 = arith.constant 0 : index
    %10 = vector.load %arg5[%c0_9, %c0_10] : memref<1x128xf32, #tpu.memory_space<vmem>>, vector<1x128xf32>
    %11 = vector.broadcast %10 : vector<1x128xf32> to vector<8x128xf32>
    %12 = arith.addf %9, %11 : vector<8x128xf32>
    %cst_11 = arith.constant 0.000000e+00 : f32
    %13 = vector.broadcast %cst_11 : f32 to vector<8x128xf32>
    %14 = arith.maximumf %12, %13 : vector<8x128xf32>
    %c0_12 = arith.constant 0 : index
    %c0_13 = arith.constant 0 : index
    %15 = vector.load %arg6[%c0_12, %c0_13] : memref<128x128xf32, #tpu.memory_space<vmem>>, vector<128x128xf32>
    %cst_14 = arith.constant dense<0.000000e+00> : vector<8x128xf32>
    %16 = tpu.matmul %14, %15, %cst_14 {dimension_numbers = #tpu.dot_dimension_numbers<[1], [0], [0], [1], [0, 0, 1, 1], [], []>} : vector<8x128xf32>, vector<128x128xf32>, vector<8x128xf32> -> vector<8x128xf32>
    %c0_15 = arith.constant 0 : index
    %c0_16 = arith.constant 0 : index
    %17 = vector.load %arg7[%c0_15, %c0_16] : memref<1x128xf32, #tpu.memory_space<vmem>>, vector<1x128xf32>
    %18 = vector.broadcast %17 : vector<1x128xf32> to vector<8x128xf32>
    %19 = arith.addf %16, %18 : vector<8x128xf32>
    %cst_17 = arith.constant 0.000000e+00 : f32
    %20 = vector.broadcast %cst_17 : f32 to vector<8x128xf32>
    %21 = arith.maximumf %19, %20 : vector<8x128xf32>
    %c0_18 = arith.constant 0 : index
    %c0_19 = arith.constant 0 : index
    %22 = vector.load %arg8[%c0_18, %c0_19] : memref<128x32xf32, #tpu.memory_space<vmem>>, vector<128x32xf32>
    %cst_20 = arith.constant dense<0.000000e+00> : vector<8x32xf32>
    %23 = tpu.matmul %21, %22, %cst_20 {dimension_numbers = #tpu.dot_dimension_numbers<[1], [0], [0], [1], [0, 0, 1, 1], [], []>} : vector<8x128xf32>, vector<128x32xf32>, vector<8x32xf32> -> vector<8x32xf32>
    %c0_21 = arith.constant 0 : index
    %c0_22 = arith.constant 0 : index
    %24 = vector.load %arg9[%c0_21, %c0_22] : memref<1x32xf32, #tpu.memory_space<vmem>>, vector<1x32xf32>
    %25 = vector.broadcast %24 : vector<1x32xf32> to vector<8x32xf32>
    %26 = arith.addf %23, %25 : vector<8x32xf32>
    %c0_23 = arith.constant 0 : index
    %c0_24 = arith.constant 0 : index
    %27 = vector.load %arg10[%c0_23, %c0_24] : memref<8x32xf32, #tpu.memory_space<vmem>>, vector<8x32xf32>
    tpu.vector_store %arg10[%c0_23, %c0_24], %26 {strides = array<i32>} : memref<8x32xf32, #tpu.memory_space<vmem>>, vector<8x32xf32>,
    return
  }
  func.func @transform_0(%arg0: i32) -> (i32, i32) {
    %c0_i32 = arith.constant 0 : i32
    %c0_i32_0 = arith.constant 0 : i32
    return %arg0, %c0_i32 : i32, i32
  }
  func.func @transform_1(%arg0: i32) -> (i32, i32) {
    %c0_i32 = arith.constant 0 : i32
    %c0_i32_0 = arith.constant 0 : i32
    %c0_i32_1 = arith.constant 0 : i32
    return %c0_i32, %c0_i32_0 : i32, i32
  }
  func.func @transform_2(%arg0: i32) -> (i32, i32) {
    %c0_i32 = arith.constant 0 : i32
    %c0_i32_0 = arith.constant 0 : i32
    %c0_i32_1 = arith.constant 0 : i32
    return %c0_i32, %c0_i32_0 : i32, i32
  }
  func.func @transform_3(%arg0: i32) -> (i32, i32) {
    %c0_i32 = arith.constant 0 : i32
    %c0_i32_0 = arith.constant 0 : i32
    %c0_i32_1 = arith.constant 0 : i32
    return %c0_i32, %c0_i32_0 : i32, i32
  }
  func.func @transform_4(%arg0: i32) -> (i32, i32) {
    %c0_i32 = arith.constant 0 : i32
    %c0_i32_0 = arith.constant 0 : i32
    %c0_i32_1 = arith.constant 0 : i32
    return %c0_i32, %c0_i32_0 : i32, i32
  }
  func.func @transform_5(%arg0: i32) -> (i32, i32) {
    %c0_i32 = arith.constant 0 : i32
    %c0_i32_0 = arith.constant 0 : i32
    %c0_i32_1 = arith.constant 0 : i32
    return %c0_i32, %c0_i32_0 : i32, i32
  }
  func.func @transform_6(%arg0: i32) -> (i32, i32) {
    %c0_i32 = arith.constant 0 : i32
    %c0_i32_0 = arith.constant 0 : i32
    %c0_i32_1 = arith.constant 0 : i32
    return %c0_i32, %c0_i32_0 : i32, i32
  }
  func.func @transform_7(%arg0: i32) -> (i32, i32) {
    %c0_i32 = arith.constant 0 : i32
    %c0_i32_0 = arith.constant 0 : i32
    %c0_i32_1 = arith.constant 0 : i32
    return %c0_i32, %c0_i32_0 : i32, i32
  }
  func.func @transform_8(%arg0: i32) -> (i32, i32) {
    %c0_i32 = arith.constant 0 : i32
    %c0_i32_0 = arith.constant 0 : i32
    %c0_i32_1 = arith.constant 0 : i32
    return %c0_i32, %c0_i32_0 : i32, i32
  }
  func.func @transform_9(%arg0: i32) -> (i32, i32) {
    %c0_i32 = arith.constant 0 : i32
    %c0_i32_0 = arith.constant 0 : i32
    return %arg0, %c0_i32 : i32, i32
  }
}

module attributes {stable_mosaic.version = 11 : i64} {
  func.func @_ae_kernel(%arg0: i32, %arg1: memref<8x32xf32, #tpu.memory_space<vmem>>, %arg2: memref<32x128xf32, #tpu.memory_space<vmem>>, %arg3: memref<1x128xf32, #tpu.memory_space<vmem>>, %arg4: memref<128x128xf32, #tpu.memory_space<vmem>>, %arg5: memref<1x128xf32, #tpu.memory_space<vmem>>, %arg6: memref<128x128xf32, #tpu.memory_space<vmem>>, %arg7: memref<1x128xf32, #tpu.memory_space<vmem>>, %arg8: memref<128x32xf32, #tpu.memory_space<vmem>>, %arg9: memref<1x32xf32, #tpu.memory_space<vmem>>, %arg10: memref<8x32xf32, #tpu.memory_space<vmem>>) attributes {dimension_semantics = [#tpu.dimension_semantics<parallel>], iteration_bounds = array<i64: 1>, scalar_prefetch = 0 : i64, scratch_operands = 0 : i64, tpu.core_type = #tpu.core_type<tc>, window_params = [{transform_indices = @transform_0, window_bounds = array<i64: 8, 32>}, {pipeline_mode = #tpu.pipeline_mode<synchronous>, transform_indices = @transform_1, window_bounds = array<i64: 32, 128>}, {pipeline_mode = #tpu.pipeline_mode<synchronous>, transform_indices = @transform_2, window_bounds = array<i64: 1, 128>}, {pipeline_mode = #tpu.pipeline_mode<synchronous>, transform_indices = @transform_3, window_bounds = array<i64: 128, 128>}, {pipeline_mode = #tpu.pipeline_mode<synchronous>, transform_indices = @transform_4, window_bounds = array<i64: 1, 128>}, {pipeline_mode = #tpu.pipeline_mode<synchronous>, transform_indices = @transform_5, window_bounds = array<i64: 128, 128>}, {pipeline_mode = #tpu.pipeline_mode<synchronous>, transform_indices = @transform_6, window_bounds = array<i64: 1, 128>}, {pipeline_mode = #tpu.pipeline_mode<synchronous>, transform_indices = @transform_7, window_bounds = array<i64: 128, 32>}, {pipeline_mode = #tpu.pipeline_mode<synchronous>, transform_indices = @transform_8, window_bounds = array<i64: 1, 32>}, {transform_indices = @transform_9, window_bounds = array<i64: 8, 32>}]} {
    %c0 = arith.constant 0 : index
    %c0_0 = arith.constant 0 : index
    %0 = vector.load %arg1[%c0, %c0_0] : memref<8x32xf32, #tpu.memory_space<vmem>>, vector<8x32xf32>
    %c0_1 = arith.constant 0 : index
    %c0_2 = arith.constant 0 : index
    %1 = vector.load %arg2[%c0_1, %c0_2] : memref<32x128xf32, #tpu.memory_space<vmem>>, vector<32x128xf32>
    %cst = arith.constant dense<0.000000e+00> : vector<8x128xf32>
    %2 = tpu.matmul %0, %1, %cst {dimension_numbers = #tpu.dot_dimension_numbers<[1], [0], [0], [1], [0, 0, 1, 1], [], []>} : vector<8x32xf32>, vector<32x128xf32>, vector<8x128xf32> -> vector<8x128xf32>
    %c0_3 = arith.constant 0 : index
    %c0_4 = arith.constant 0 : index
    %3 = vector.load %arg3[%c0_3, %c0_4] : memref<1x128xf32, #tpu.memory_space<vmem>>, vector<1x128xf32>
    %4 = vector.broadcast %3 : vector<1x128xf32> to vector<8x128xf32>
    %5 = arith.addf %2, %4 : vector<8x128xf32>
    %cst_5 = arith.constant 0.000000e+00 : f32
    %6 = vector.broadcast %cst_5 : f32 to vector<8x128xf32>
    %7 = arith.maximumf %5, %6 : vector<8x128xf32>
    %c0_6 = arith.constant 0 : index
    %c0_7 = arith.constant 0 : index
    %8 = vector.load %arg4[%c0_6, %c0_7] : memref<128x128xf32, #tpu.memory_space<vmem>>, vector<128x128xf32>
    %cst_8 = arith.constant dense<0.000000e+00> : vector<8x128xf32>
    %9 = tpu.matmul %7, %8, %cst_8 {dimension_numbers = #tpu.dot_dimension_numbers<[1], [0], [0], [1], [0, 0, 1, 1], [], []>} : vector<8x128xf32>, vector<128x128xf32>, vector<8x128xf32> -> vector<8x128xf32>
    %c0_9 = arith.constant 0 : index
    %c0_10 = arith.constant 0 : index
    %10 = vector.load %arg5[%c0_9, %c0_10] : memref<1x128xf32, #tpu.memory_space<vmem>>, vector<1x128xf32>
    %11 = vector.broadcast %10 : vector<1x128xf32> to vector<8x128xf32>
    %12 = arith.addf %9, %11 : vector<8x128xf32>
    %cst_11 = arith.constant 0.000000e+00 : f32
    %13 = vector.broadcast %cst_11 : f32 to vector<8x128xf32>
    %14 = arith.maximumf %12, %13 : vector<8x128xf32>
    %c0_12 = arith.constant 0 : index
    %c0_13 = arith.constant 0 : index
    %15 = vector.load %arg6[%c0_12, %c0_13] : memref<128x128xf32, #tpu.memory_space<vmem>>, vector<128x128xf32>
    %cst_14 = arith.constant dense<0.000000e+00> : vector<8x128xf32>
    %16 = tpu.matmul %14, %15, %cst_14 {dimension_numbers = #tpu.dot_dimension_numbers<[1], [0], [0], [1], [0, 0, 1, 1], [], []>} : vector<8x128xf32>, vector<128x128xf32>, vector<8x128xf32> -> vector<8x128xf32>
    %c0_15 = arith.constant 0 : index
    %c0_16 = arith.constant 0 : index
    %17 = vector.load %arg7[%c0_15, %c0_16] : memref<1x128xf32, #tpu.memory_space<vmem>>, vector<1x128xf32>
    %18 = vector.broadcast %17 : vector<1x128xf32> to vector<8x128xf32>
    %19 = arith.addf %16, %18 : vector<8x128xf32>
    %cst_17 = arith.constant 0.000000e+00 : f32
    %20 = vector.broadcast %cst_17 : f32 to vector<8x128xf32>
    %21 = arith.maximumf %19, %20 : vector<8x128xf32>
    %c0_18 = arith.constant 0 : index
    %c0_19 = arith.constant 0 : index
    %22 = vector.load %arg8[%c0_18, %c0_19] : memref<128x32xf32, #tpu.memory_space<vmem>>, vector<128x32xf32>
    %cst_20 = arith.constant dense<0.000000e+00> : vector<8x32xf32>
    %23 = tpu.matmul %21, %22, %cst_20 {dimension_numbers = #tpu.dot_dimension_numbers<[1], [0], [0], [1], [0, 0, 1, 1], [], []>} : vector<8x128xf32>, vector<128x32xf32>, vector<8x32xf32> -> vector<8x32xf32>
    %c0_21 = arith.constant 0 : index
    %c0_22 = arith.constant 0 : index
    %24 = vector.load %arg9[%c0_21, %c0_22] : memref<1x32xf32, #tpu.memory_space<vmem>>, vector<1x32xf32>
    %25 = vector.broadcast %24 : vector<1x32xf32> to vector<8x32xf32>
    %26 = arith.addf %23, %25 : vector<8x32xf32>
    %c0_23 = arith.constant 0 : index
    %c0_24 = arith.constant 0 : index
    %27 = vector.load %arg10[%c0_23, %c0_24] : memref<8x32xf32, #tpu.memory_space<vmem>>, vector<8x32xf32>
    tpu.vector_store %arg10[%c0_23, %c0_24], %26 {strides = array<i32>} : memref<8x32xf32, #tpu.memory_space<vmem>>, vector<8x32xf32>,
    return
  }
  func.func @transform_0(%arg0: i32) -> (i32, i32) {
    %c0_i32 = arith.constant 0 : i32
    %c0_i32_0 = arith.constant 0 : i32
    return %arg0, %c0_i32 : i32, i32
  }
  func.func @transform_1(%arg0: i32) -> (i32, i32) {
    %c0_i32 = arith.constant 0 : i32
    %c0_i32_0 = arith.constant 0 : i32
    %c0_i32_1 = arith.constant 0 : i32
    return %c0_i32, %c0_i32_0 : i32, i32
  }
  func.func @transform_2(%arg0: i32) -> (i32, i32) {
    %c0_i32 = arith.constant 0 : i32
    %c0_i32_0 = arith.constant 0 : i32
    %c0_i32_1 = arith.constant 0 : i32
    return %c0_i32, %c0_i32_0 : i32, i32
  }
  func.func @transform_3(%arg0: i32) -> (i32, i32) {
    %c0_i32 = arith.constant 0 : i32
    %c0_i32_0 = arith.constant 0 : i32
    %c0_i32_1 = arith.constant 0 : i32
    return %c0_i32, %c0_i32_0 : i32, i32
  }
  func.func @transform_4(%arg0: i32) -> (i32, i32) {
    %c0_i32 = arith.constant 0 : i32
    %c0_i32_0 = arith.constant 0 : i32
    %c0_i32_1 = arith.constant 0 : i32
    return %c0_i32, %c0_i32_0 : i32, i32
  }
  func.func @transform_5(%arg0: i32) -> (i32, i32) {
    %c0_i32 = arith.constant 0 : i32
    %c0_i32_0 = arith.constant 0 : i32
    %c0_i32_1 = arith.constant 0 : i32
    return %c0_i32, %c0_i32_0 : i32, i32
  }
  func.func @transform_6(%arg0: i32) -> (i32, i32) {
    %c0_i32 = arith.constant 0 : i32
    %c0_i32_0 = arith.constant 0 : i32
    %c0_i32_1 = arith.constant 0 : i32
    return %c0_i32, %c0_i32_0 : i32, i32
  }
  func.func @transform_7(%arg0: i32) -> (i32, i32) {
    %c0_i32 = arith.constant 0 : i32
    %c0_i32_0 = arith.constant 0 : i32
    %c0_i32_1 = arith.constant 0 : i32
    return %c0_i32, %c0_i32_0 : i32, i32
  }
  func.func @transform_8(%arg0: i32) -> (i32, i32) {
    %c0_i32 = arith.constant 0 : i32
    %c0_i32_0 = arith.constant 0 : i32
    %c0_i32_1 = arith.constant 0 : i32
    return %c0_i32, %c0_i32_0 : i32, i32
  }
  func.func @transform_9(%arg0: i32) -> (i32, i32) {
    %c0_i32 = arith.constant 0 : i32
    %c0_i32_0 = arith.constant 0 : i32
    return %arg0, %c0_i32 : i32, i32
  }
}

</mosaic_0001>

<bundles_post_ra>
// kernel: tpu_custom_call.1
= control target key start
LH: loop header
LB: loop body
LE: loop exit
PB: predicated region body
PF: predicated region fallthrough
CT: control target
= control target key end

     0   :  { %14 = vsyncpa [#allocation3], 0  ;;  %s981_s0 = inlined_call_operand.vmem [shape: f32[8,32], index: 0, kind: input, shape index: {}]   ;;  %s982_s1 = inlined_call_operand.vmem [shape: f32[32,128], index: 1, kind: input, shape index: {}]   ;;  %s983_s2 = inlined_call_operand.vmem [shape: f32[1,128], index: 2, kind: input, shape index: {}]   ;;  %s984_s3 = inlined_call_operand.vmem [shape: f32[128,128], index: 3, kind: input, shape index: {}]   ;;  %s985_s4 = inlined_call_operand.vmem [shape: f32[1,128], index: 4, kind: input, shape index: {}]   ;;  %s986_s5 = inlined_call_operand.hbm [shape: f32[128,128], index: 5, kind: input, shape index: {}]   ;;  %s987_s6 = inlined_call_operand.vmem [shape: f32[1,128], index: 6, kind: input, shape index: {}]   ;;  %s988_s7 = inlined_call_operand.vmem [shape: f32[128,32], index: 7, kind: input, shape index: {}]   ;;  %s989_s8 = inlined_call_operand.vmem [shape: f32[1,32], index: 8, kind: input, shape index: {}]   ;;  %s990_s9 = inlined_call_operand.hbm [shape: f32[8,32], index: 9, kind: output, shape index: {}]  }
   0x1   :  { %15 = vsyncpa [#allocation4], 0  ;;  %s741_s30 = smov [#allocation2]   ;;  %s693_s13 = scalar_lea.hbm %s986_s5, 2048 }
   0x2   :  { %s31_s10 = sshll.u32 %s741_s30, 4  ;;  %p694_p0 = scmp.ne.s32.totalorder %s986_s5, %s693_s13  ;;  %s32_s10 = int_to_ptr.vmem [resolvable:$true] %s31_s10 }
   0x3   :  { %p697_p1 = scmp.lt.u32.totalorder %s693_s13, %s986_s5 }
   0x5   :  { %p699_p2 = pnand %p697_p1, %p694_p0 }
   0x7   :  { %702 = shalt.err (!%p699_p2)
}
   0x8   :  { %s703_s18 = scalar_lea.vmem %s32_s10, 2048  ;;  %p708_p4 = scmp.lt.s32.totalorder %s32_s10, %s32_s10 }
   0x9   :  { %p704_p3 = scmp.ne.s32.totalorder %s32_s10, %s703_s18  ;;  %p709_p5 = scmp.lt.s32.totalorder %s703_s18, %s703_s18 }
   0xb   :  { %p710_p6 = por %p709_p5, %p708_p4 }
   0xd   :  { %p711_p7 = pnand %p710_p6, %p704_p3 }
   0xf   :  { %714 = shalt.err (!%p711_p7)
}
  0x10   :  { %s742_s19 = smov 128   ;;  %s743_s20 = smov 8  }
  0x11   :  { %37 = dma.hbm_to_vmem [thread:$0]  %s986_s5, 2048, %s32_s10, [#allocation3], %s742_s19, %s742_s19, %s743_s20  }
  0x12   :  { %737 = dma.done.wait [#allocation3], 2048  }
  0x13   :  { %738 = vsyncadd [#allocation3], 4294965248  ;;  %v744_v0 = vmov 0.0|0.0   ;;  %vm745_vm0 = vmmov 0   ;;  %v746_v1 = vmov 0.0   ;;  %v48_v2 = vld [vmem:[%s982_s1] sm:$0xff] }
  0x14   :  { %608 = vmatprep.subr.bf16.mxu0 %v744_v0  ;;  %500 = vmatprep.mubr.msk.f32.mxu0 %vm745_vm0, %v746_v1  ;;  %v49_v3 = vld [vmem:[%s982_s1 + $0x8] sm:$0xff]  ;;  %v50_v4 = vld [vmem:[%s982_s1 + $0x10] sm:$0xff]  ;;  %v51_v6 = vld [vmem:[%s982_s1 + $0x18] sm:$0xff]  ;;  %vm59_vm1 = vcmask 261120   ;;  %s747_s27 = smov [#allocation5]  }
  0x15   :  { %614 = vmatprep.subr.bf16.mxu1 %v744_v0  ;;  %535 = vmatprep.mubr.msk.f32.mxu1 %vm745_vm0, %v746_v1  ;;  %v609_v5 = vpack.c.bf16 %v49_v3, %v48_v2  ;;  %v134_v7 = vld [vmem:[%s984_s3] sm:$0xff]  ;;  %v135_v8 = vld [vmem:[%s984_s3 + $0x8] sm:$0xff]  ;;  %v136_v9 = vld [vmem:[%s984_s3 + $0x10] sm:$0xff]  ;;  %v612_v11 = vpack.c.bf16 %v51_v6, %v50_v4  ;;  %s422_s28 = sshll.u32 %s747_s27, 4  ;;  %s423_s28 = int_to_ptr.vmem [resolvable:$true] %s422_s28 }
  0x16   :  { %v137_v10 = vld [vmem:[%s984_s3 + $0x18] sm:$0xff]  ;;  %v615_v12 = vpack.c.bf16 %v135_v8, %v134_v7  ;;  %v138_v14 = vld [vmem:[%s984_s3 + $0x20] sm:$0xff]  ;;  %v139_v15 = vld [vmem:[%s984_s3 + $0x28] sm:$0xff]  ;;  %p720_p9 = scmp.lt.s32.totalorder %s423_s28, %s423_s28 }
  0x17   :  { %610 = vmatpush3.bf16.msra.mxu0 %v609_v5  ;;  %v618_v13 = vpack.c.bf16 %v137_v10, %v136_v9  ;;  %v47_v16 = vld [vmem:[%s981_s0] sm:$0xff]  ;;  %v621_v17 = vpack.c.bf16 %v139_v15, %v138_v14  ;;  %v140_v18 = vld [vmem:[%s984_s3 + $0x30] sm:$0xff]  ;;  %v141_v19 = vld [vmem:[%s984_s3 + $0x38] sm:$0xff] }
  0x18   :  { %611 = vmatprep.subr.bf16.mxu0 %v744_v0  ;;  %616 = vmatpush3.bf16.msra.mxu1 %v615_v12  ;;  %v624_v20 = vpack.c.bf16 %v141_v19, %v140_v18  ;;  %v142_v21 = vld [vmem:[%s984_s3 + $0x40] sm:$0xff]  ;;  %v143_v22 = vld [vmem:[%s984_s3 + $0x48] sm:$0xff]  ;;  %v144_v24 = vld [vmem:[%s984_s3 + $0x50] sm:$0xff] }
  0x19   :  { %617 = vmatprep.subr.bf16.mxu1 %v744_v0  ;;  %v627_v23 = vpack.c.bf16 %v143_v22, %v142_v21  ;;  %v145_v25 = vld [vmem:[%s984_s3 + $0x58] sm:$0xff]  ;;  %v146_v27 = vld [vmem:[%s984_s3 + $0x60] sm:$0xff]  ;;  %v147_v28 = vld [vmem:[%s984_s3 + $0x68] sm:$0xff] }
  0x1a   :  { %v630_v26 = vpack.c.bf16 %v145_v25, %v144_v24  ;;  %v633_v29 = vpack.c.bf16 %v147_v28, %v146_v27  ;;  %v148_v30 = vld [vmem:[%s984_s3 + $0x70] sm:$0xff]  ;;  %v149_v31 = vld [vmem:[%s984_s3 + $0x78] sm:$0xff]  ;;  %v228_v33 = vld [vmem:[#allocation2] sm:$0xff] }
  0x1b   :  { %613 = vmatpush3.bf16.msra.mxu0 %v612_v11  ;;  %v636_v32 = vpack.c.bf16 %v149_v31, %v148_v30  ;;  %v229_v34 = vld [vmem:[#allocation2 + $0x8] sm:$0xff]  ;;  %v230_v35 = vld [vmem:[#allocation2 + $0x10] sm:$0xff]  ;;  %v231_v37 = vld [vmem:[#allocation2 + $0x18] sm:$0xff] }
  0x1c   :  { %638 = vmatprep.subr.bf16.mxu0 %v744_v0  ;;  %619 = vmatpush3.bf16.msra.mxu1 %v618_v13  ;;  %v639_v36 = vpack.c.bf16 %v229_v34, %v228_v33  ;;  %v642_v38 = vpack.c.bf16 %v231_v37, %v230_v35  ;;  %v232_v39 = vld [vmem:[#allocation2 + $0x20] sm:$0xff]  ;;  %v233_v40 = vld [vmem:[#allocation2 + $0x28] sm:$0xff]  ;;  %v234_v42 = vld [vmem:[#allocation2 + $0x30] sm:$0xff] }
  0x1d   :  { %620 = vmatprep.subr.bf16.mxu1 %v744_v0  ;;  %v645_v41 = vpack.c.bf16 %v233_v40, %v232_v39  ;;  %v235_v43 = vld [vmem:[#allocation2 + $0x38] sm:$0xff]  ;;  %v236_v45 = vld [vmem:[#allocation2 + $0x40] sm:$0xff]  ;;  %v237_v46 = vld [vmem:[#allocation2 + $0x48] sm:$0xff] }
  0x1e   :  { %501 = vmatmul.mubr.msk.f32.vlgmr.msra.gmra.mrb[0].mxu0 %vm59_vm1, %v47_v16  ;;  %v648_v44 = vpack.c.bf16 %v235_v43, %v234_v42  ;;  %v651_v47 = vpack.c.bf16 %v237_v46, %v236_v45  ;;  %v238_v48 = vld [vmem:[#allocation2 + $0x50] sm:$0xff]  ;;  %v239_v49 = vld [vmem:[#allocation2 + $0x58] sm:$0xff]  ;;  %v240_v51 = vld [vmem:[#allocation2 + $0x60] sm:$0xff] }
  0x1f   :  { %570 = vmatprep.mubr.msk.f32.mxu0 %vm745_vm0, %v746_v1  ;;  %640 = vmatpush3.bf16.msra.mxu0 %v639_v36  ;;  %v654_v50 = vpack.c.bf16 %v239_v49, %v238_v48  ;;  %v241_v52 = vld [vmem:[#allocation2 + $0x68] sm:$0xff]  ;;  %v431_v54 = vld [vmem:[%s983_s2] ss:$0 sm:$0xff]  ;;  %v242_v59 = vld [vmem:[#allocation2 + $0x70] sm:$0xff] }
  0x20   :  { %622 = vmatpush3.bf16.msra.mxu1 %v621_v17  ;;  %641 = vmatprep.subr.bf16.mxu0 %v744_v0  ;;  %v657_v53 = vpack.c.bf16 %v241_v52, %v240_v51  ;;  %v243_v60 = vld [vmem:[#allocation2 + $0x78] sm:$0xff]  ;;  %v322_v62 = vld [vmem:[%s988_s7] sm:$0xff]  ;;  %v323_v63 = vld [vmem:[%s988_s7 + $0x8] sm:$0xff] }
  0x21   :  { %623 = vmatprep.subr.bf16.mxu1 %v744_v0  ;;  %v660_v61 = vpack.c.bf16 %v243_v60, %v242_v59  ;;  %v324_v2 = vld [vmem:[%s988_s7 + $0x10] sm:$0xff]  ;;  %v663_v3 = vpack.c.bf16 %v323_v63, %v322_v62  ;;  %v326_v5 = vld [vmem:[%s988_s7 + $0x20] sm:$0xff]  ;;  %v327_v6 = vld [vmem:[%s988_s7 + $0x28] sm:$0xff] }
  0x22   :  { %v669_v7 = vpack.c.bf16 %v327_v6, %v326_v5  ;;  %v328_v8 = vld [vmem:[%s988_s7 + $0x30] sm:$0xff]  ;;  %v329_v9 = vld [vmem:[%s988_s7 + $0x38] sm:$0xff]  ;;  %v330_v11 = vld [vmem:[%s988_s7 + $0x40] sm:$0xff] }
  0x23   :  { %643 = vmatpush3.bf16.msra.mxu0 %v642_v38  ;;  %v672_v10 = vpack.c.bf16 %v329_v9, %v328_v8  ;;  %v331_v12 = vld [vmem:[%s988_s7 + $0x48] sm:$0xff]  ;;  %v332_v14 = vld [vmem:[%s988_s7 + $0x50] sm:$0xff]  ;;  %v333_v15 = vld [vmem:[%s988_s7 + $0x58] sm:$0xff] }
  0x24   :  { %625 = vmatpush3.bf16.msra.mxu1 %v624_v20  ;;  %644 = vmatprep.subr.bf16.mxu0 %v744_v0  ;;  %v675_v13 = vpack.c.bf16 %v331_v12, %v330_v11  ;;  %v678_v16 = vpack.c.bf16 %v333_v15, %v332_v14  ;;  %v334_v17 = vld [vmem:[%s988_s7 + $0x60] sm:$0xff]  ;;  %v335_v18 = vld [vmem:[%s988_s7 + $0x68] sm:$0xff]  ;;  %v336_v25 = vld [vmem:[%s988_s7 + $0x70] sm:$0xff] }
  0x25   :  { %626 = vmatprep.subr.bf16.mxu1 %v744_v0  ;;  %v681_v19 = vpack.c.bf16 %v335_v18, %v334_v17  ;;  %v433_v20 = vld [vmem:[%s985_s4] ss:$0 sm:$0xff] }
  0x27   :  { %646 = vmatpush3.bf16.msra.mxu0 %v645_v41 }
  0x28   :  { %628 = vmatpush3.bf16.msra.mxu1 %v627_v23  ;;  %647 = vmatprep.subr.bf16.mxu0 %v744_v0 }
  0x29   :  { %629 = vmatprep.subr.bf16.mxu1 %v744_v0 }
  0x2b   :  { %649 = vmatpush3.bf16.msra.mxu0 %v648_v44 }
  0x2c   :  { %631 = vmatpush3.bf16.msra.mxu1 %v630_v26  ;;  %650 = vmatprep.subr.bf16.mxu0 %v744_v0  ;;  %v337_v26 = vld [vmem:[%s988_s7 + $0x78] sm:$0xff] }
  0x2d   :  { %632 = vmatprep.subr.bf16.mxu1 %v744_v0  ;;  %v684_v27 = vpack.c.bf16 %v337_v26, %v336_v25 }
  0x2f   :  { %652 = vmatpush3.bf16.msra.mxu0 %v651_v47 }
  0x30   :  { %634 = vmatpush3.bf16.msra.mxu1 %v633_v29  ;;  %653 = vmatprep.subr.bf16.mxu0 %v744_v0 }
  0x31   :  { %635 = vmatprep.subr.bf16.mxu1 %v744_v0 }
  0x33   :  { %655 = vmatpush3.bf16.msra.mxu0 %v654_v50 }
  0x34   :  { %637 = vmatpush3.bf16.msra.mxu1 %v636_v32  ;;  %656 = vmatprep.subr.bf16.mxu0 %v744_v0  ;;  %v435_v32 = vld [vmem:[%s989_s8] ss:$0 sm:$0xff] }
  0x35   :  { %662 = vmatprep.subr.bf16.mxu1 %v744_v0 }
  0x37   :  { %658 = vmatpush3.bf16.msra.mxu0 %v657_v53 }
  0x38   :  { %659 = vmatprep.subr.bf16.mxu0 %v744_v0 }
  0x3b   :  { %661 = vmatpush3.bf16.msra.mxu0 %v660_v61 }
  0xf1   :  { %v129_v55 = vpop.f32.mrb[0].mxu0 }
  0xf2   :  { %v130_v56 = vadd.f32 %v431_v54, %v129_v55  ;;  %v502_v57 = vpop.f32.mrb[1].mxu0 }
  0xf4   :  { %v133_v58 = vmax.f32 %v130_v56, 0.0 }
  0xf6   :  { %536 = vmatmul.mubr.f32.vlgmr.msra.gmra.mrb[0].mxu1 %v133_v58 }
  0xf7   :  { %605 = vmatprep.mubr.msk.f32.mxu1 %vm745_vm0, %v746_v1  ;;  %v325_v1 = vld [vmem:[%s988_s7 + $0x18] sm:$0xff]  ;;  %664 = vmatpush3.bf16.msra.mxu1 %v663_v3  ;;  %s715_s7 = scalar_lea.vmem %s423_s28, 128 }
  0xf8   :  { %v666_v4 = vpack.c.bf16 %v325_v1, %v324_v2  ;;  %665 = vmatprep.subr.bf16.mxu1 %v744_v0  ;;  %p716_p8 = scmp.ne.s32.totalorder %s423_s28, %s715_s7  ;;  %p721_p10 = scmp.lt.s32.totalorder %s715_s7, %s715_s7 }
  0xfa   :  { %p722_p11 = por %p721_p10, %p720_p9 }
  0xfb   :  { %667 = vmatpush3.bf16.msra.mxu1 %v666_v4 }
  0xfc   :  { %668 = vmatprep.subr.bf16.mxu1 %v744_v0  ;;  %p723_p12 = pnand %p722_p11, %p716_p8 }
  0xff   :  { %670 = vmatpush3.bf16.msra.mxu1 %v669_v7 }
 0x100   :  { %671 = vmatprep.subr.bf16.mxu1 %v744_v0 }
 0x103   :  { %673 = vmatpush3.bf16.msra.mxu1 %v672_v10 }
 0x104   :  { %674 = vmatprep.subr.bf16.mxu1 %v744_v0 }
 0x107   :  { %676 = vmatpush3.bf16.msra.mxu1 %v675_v13 }
 0x108   :  { %677 = vmatprep.subr.bf16.mxu1 %v744_v0 }
 0x10b   :  { %679 = vmatpush3.bf16.msra.mxu1 %v678_v16 }
 0x10c   :  { %680 = vmatprep.subr.bf16.mxu1 %v744_v0 }
 0x10f   :  { %682 = vmatpush3.bf16.msra.mxu1 %v681_v19 }
 0x110   :  { %683 = vmatprep.subr.bf16.mxu1 %v744_v0  ;;  %v434_v0 = vld [vmem:[%s987_s6] ss:$0 sm:$0xff] }
 0x113   :  { %685 = vmatpush3.bf16.msra.mxu1 %v684_v27 }
 0x1c9   :  { %v223_v21 = vpop.f32.mrb[0].mxu1 }
 0x1ca   :  { %v224_v22 = vadd.f32 %v433_v20, %v223_v21  ;;  %v537_v23 = vpop.f32.mrb[1].mxu1 }
 0x1cc   :  { %v227_v24 = vmax.f32 %v224_v22, 0.0 }
 0x1ce   :  { %571 = vmatmul.mubr.f32.vlgmr.msra.gmra.mrb[2].mxu0 %v227_v24 }
 0x2a1   :  { %v317_v28 = vpop.f32.mrb[2].mxu0 }
 0x2a2   :  { %v318_v29 = vadd.f32 %v434_v0, %v317_v28  ;;  %v572_v30 = vpop.f32.mrb[3].mxu0 }
 0x2a4   :  { %v321_v31 = vmax.f32 %v318_v29, 0.0 }
 0x2a6   :  { %606 = vmatmul.mubr.f32.vlgmr.msra.gmra.mrb[2].mxu1 %v321_v31 }
 0x379   :  { %v411_v33 = vpop.f32.mrb[2].mxu1 }
 0x37a   :  { %v412_v34 = vadd.f32 %v435_v32, %v411_v33  ;;  %v607_v35 = vpop.f32.mrb[3].mxu1 }
 0x37c   :  { %415 = vst.msk [vmem:[#allocation5] sm:$0xff] %vm59_vm1, %v412_v34 }
 0x37d   :  { %726 = shalt.err (!%p723_p12)
}
 0x37e   :  { %s727_s30 = scalar_lea.hbm %s990_s9, 128 }
 0x37f   :  { %p728_p13 = scmp.ne.s32.totalorder %s990_s9, %s727_s30  ;;  %p731_p0 = scmp.lt.u32.totalorder %s727_s30, %s990_s9 }
 0x381   :  { %p733_p1 = pnand %p731_p0, %p728_p13 }
 0x383   :  { %736 = shalt.err (!%p733_p1)
}
 0x384   :  { %425 = dma.vmem_to_hbm [thread:$0]  %s423_s28, 128, %s990_s9, [#allocation4]  }
 0x385   :  { %739 = dma.done.wait [#allocation4], 128  }
 0x386   :  { %740 = vsyncadd [#allocation4], 4294967168 }
 0x387   :  { %429 = vsyncpa [#allocation3], 1 }
 0x388   :  { %430 = vsyncpa [#allocation4], 1 }

// kernel: tpu_custom_call.1
= control target key start
LH: loop header
LB: loop body
LE: loop exit
PB: predicated region body
PF: predicated region fallthrough
CT: control target
= control target key end

     0   :  { %14 = vsyncpa [#allocation3], 0  ;;  %s981_s0 = inlined_call_operand.vmem [shape: f32[8,32], index: 0, kind: input, shape index: {}]   ;;  %s982_s1 = inlined_call_operand.vmem [shape: f32[32,128], index: 1, kind: input, shape index: {}]   ;;  %s983_s2 = inlined_call_operand.vmem [shape: f32[1,128], index: 2, kind: input, shape index: {}]   ;;  %s984_s3 = inlined_call_operand.vmem [shape: f32[128,128], index: 3, kind: input, shape index: {}]   ;;  %s985_s4 = inlined_call_operand.vmem [shape: f32[1,128], index: 4, kind: input, shape index: {}]   ;;  %s986_s5 = inlined_call_operand.hbm [shape: f32[128,128], index: 5, kind: input, shape index: {}]   ;;  %s987_s6 = inlined_call_operand.vmem [shape: f32[1,128], index: 6, kind: input, shape index: {}]   ;;  %s988_s7 = inlined_call_operand.vmem [shape: f32[128,32], index: 7, kind: input, shape index: {}]   ;;  %s989_s8 = inlined_call_operand.vmem [shape: f32[1,32], index: 8, kind: input, shape index: {}]   ;;  %s990_s9 = inlined_call_operand.hbm [shape: f32[8,32], index: 9, kind: output, shape index: {}]  }
   0x1   :  { %15 = vsyncpa [#allocation4], 0  ;;  %s741_s30 = smov [#allocation2]   ;;  %s693_s13 = scalar_lea.hbm %s986_s5, 2048 }
   0x2   :  { %s31_s10 = sshll.u32 %s741_s30, 4  ;;  %p694_p0 = scmp.ne.s32.totalorder %s986_s5, %s693_s13  ;;  %s32_s10 = int_to_ptr.vmem [resolvable:$true] %s31_s10 }
   0x3   :  { %p697_p1 = scmp.lt.u32.totalorder %s693_s13, %s986_s5 }
   0x5   :  { %p699_p2 = pnand %p697_p1, %p694_p0 }
   0x7   :  { %702 = shalt.err (!%p699_p2)
}
   0x8   :  { %s703_s18 = scalar_lea.vmem %s32_s10, 2048  ;;  %p708_p4 = scmp.lt.s32.totalorder %s32_s10, %s32_s10 }
   0x9   :  { %p704_p3 = scmp.ne.s32.totalorder %s32_s10, %s703_s18  ;;  %p709_p5 = scmp.lt.s32.totalorder %s703_s18, %s703_s18 }
   0xb   :  { %p710_p6 = por %p709_p5, %p708_p4 }
   0xd   :  { %p711_p7 = pnand %p710_p6, %p704_p3 }
   0xf   :  { %714 = shalt.err (!%p711_p7)
}
  0x10   :  { %s742_s19 = smov 128   ;;  %s743_s20 = smov 8  }
  0x11   :  { %37 = dma.hbm_to_vmem [thread:$0]  %s986_s5, 2048, %s32_s10, [#allocation3], %s742_s19, %s742_s19, %s743_s20  }
  0x12   :  { %737 = dma.done.wait [#allocation3], 2048  }
  0x13   :  { %738 = vsyncadd [#allocation3], 4294965248  ;;  %v744_v0 = vmov 0.0|0.0   ;;  %vm745_vm0 = vmmov 0   ;;  %v746_v1 = vmov 0.0   ;;  %v48_v2 = vld [vmem:[%s982_s1] sm:$0xff] }
  0x14   :  { %608 = vmatprep.subr.bf16.mxu0 %v744_v0  ;;  %500 = vmatprep.mubr.msk.f32.mxu0 %vm745_vm0, %v746_v1  ;;  %v49_v3 = vld [vmem:[%s982_s1 + $0x8] sm:$0xff]  ;;  %v50_v4 = vld [vmem:[%s982_s1 + $0x10] sm:$0xff]  ;;  %v51_v6 = vld [vmem:[%s982_s1 + $0x18] sm:$0xff]  ;;  %vm59_vm1 = vcmask 261120   ;;  %s747_s27 = smov [#allocation5]  }
  0x15   :  { %614 = vmatprep.subr.bf16.mxu1 %v744_v0  ;;  %535 = vmatprep.mubr.msk.f32.mxu1 %vm745_vm0, %v746_v1  ;;  %v609_v5 = vpack.c.bf16 %v49_v3, %v48_v2  ;;  %v134_v7 = vld [vmem:[%s984_s3] sm:$0xff]  ;;  %v135_v8 = vld [vmem:[%s984_s3 + $0x8] sm:$0xff]  ;;  %v136_v9 = vld [vmem:[%s984_s3 + $0x10] sm:$0xff]  ;;  %v612_v11 = vpack.c.bf16 %v51_v6, %v50_v4  ;;  %s422_s28 = sshll.u32 %s747_s27, 4  ;;  %s423_s28 = int_to_ptr.vmem [resolvable:$true] %s422_s28 }
  0x16   :  { %v137_v10 = vld [vmem:[%s984_s3 + $0x18] sm:$0xff]  ;;  %v615_v12 = vpack.c.bf16 %v135_v8, %v134_v7  ;;  %v138_v14 = vld [vmem:[%s984_s3 + $0x20] sm:$0xff]  ;;  %v139_v15 = vld [vmem:[%s984_s3 + $0x28] sm:$0xff]  ;;  %p720_p9 = scmp.lt.s32.totalorder %s423_s28, %s423_s28 }
  0x17   :  { %610 = vmatpush3.bf16.msra.mxu0 %v609_v5  ;;  %v618_v13 = vpack.c.bf16 %v137_v10, %v136_v9  ;;  %v47_v16 = vld [vmem:[%s981_s0] sm:$0xff]  ;;  %v621_v17 = vpack.c.bf16 %v139_v15, %v138_v14  ;;  %v140_v18 = vld [vmem:[%s984_s3 + $0x30] sm:$0xff]  ;;  %v141_v19 = vld [vmem:[%s984_s3 + $0x38] sm:$0xff] }
  0x18   :  { %611 = vmatprep.subr.bf16.mxu0 %v744_v0  ;;  %616 = vmatpush3.bf16.msra.mxu1 %v615_v12  ;;  %v624_v20 = vpack.c.bf16 %v141_v19, %v140_v18  ;;  %v142_v21 = vld [vmem:[%s984_s3 + $0x40] sm:$0xff]  ;;  %v143_v22 = vld [vmem:[%s984_s3 + $0x48] sm:$0xff]  ;;  %v144_v24 = vld [vmem:[%s984_s3 + $0x50] sm:$0xff] }
  0x19   :  { %617 = vmatprep.subr.bf16.mxu1 %v744_v0  ;;  %v627_v23 = vpack.c.bf16 %v143_v22, %v142_v21  ;;  %v145_v25 = vld [vmem:[%s984_s3 + $0x58] sm:$0xff]  ;;  %v146_v27 = vld [vmem:[%s984_s3 + $0x60] sm:$0xff]  ;;  %v147_v28 = vld [vmem:[%s984_s3 + $0x68] sm:$0xff] }
  0x1a   :  { %v630_v26 = vpack.c.bf16 %v145_v25, %v144_v24  ;;  %v633_v29 = vpack.c.bf16 %v147_v28, %v146_v27  ;;  %v148_v30 = vld [vmem:[%s984_s3 + $0x70] sm:$0xff]  ;;  %v149_v31 = vld [vmem:[%s984_s3 + $0x78] sm:$0xff]  ;;  %v228_v33 = vld [vmem:[#allocation2] sm:$0xff] }
  0x1b   :  { %613 = vmatpush3.bf16.msra.mxu0 %v612_v11  ;;  %v636_v32 = vpack.c.bf16 %v149_v31, %v148_v30  ;;  %v229_v34 = vld [vmem:[#allocation2 + $0x8] sm:$0xff]  ;;  %v230_v35 = vld [vmem:[#allocation2 + $0x10] sm:$0xff]  ;;  %v231_v37 = vld [vmem:[#allocation2 + $0x18] sm:$0xff] }
  0x1c   :  { %638 = vmatprep.subr.bf16.mxu0 %v744_v0  ;;  %619 = vmatpush3.bf16.msra.mxu1 %v618_v13  ;;  %v639_v36 = vpack.c.bf16 %v229_v34, %v228_v33  ;;  %v642_v38 = vpack.c.bf16 %v231_v37, %v230_v35  ;;  %v232_v39 = vld [vmem:[#allocation2 + $0x20] sm:$0xff]  ;;  %v233_v40 = vld [vmem:[#allocation2 + $0x28] sm:$0xff]  ;;  %v234_v42 = vld [vmem:[#allocation2 + $0x30] sm:$0xff] }
  0x1d   :  { %620 = vmatprep.subr.bf16.mxu1 %v744_v0  ;;  %v645_v41 = vpack.c.bf16 %v233_v40, %v232_v39  ;;  %v235_v43 = vld [vmem:[#allocation2 + $0x38] sm:$0xff]  ;;  %v236_v45 = vld [vmem:[#allocation2 + $0x40] sm:$0xff]  ;;  %v237_v46 = vld [vmem:[#allocation2 + $0x48] sm:$0xff] }
  0x1e   :  { %501 = vmatmul.mubr.msk.f32.vlgmr.msra.gmra.mrb[0].mxu0 %vm59_vm1, %v47_v16  ;;  %v648_v44 = vpack.c.bf16 %v235_v43, %v234_v42  ;;  %v651_v47 = vpack.c.bf16 %v237_v46, %v236_v45  ;;  %v238_v48 = vld [vmem:[#allocation2 + $0x50] sm:$0xff]  ;;  %v239_v49 = vld [vmem:[#allocation2 + $0x58] sm:$0xff]  ;;  %v240_v51 = vld [vmem:[#allocation2 + $0x60] sm:$0xff] }
  0x1f   :  { %570 = vmatprep.mubr.msk.f32.mxu0 %vm745_vm0, %v746_v1  ;;  %640 = vmatpush3.bf16.msra.mxu0 %v639_v36  ;;  %v654_v50 = vpack.c.bf16 %v239_v49, %v238_v48  ;;  %v241_v52 = vld [vmem:[#allocation2 + $0x68] sm:$0xff]  ;;  %v431_v54 = vld [vmem:[%s983_s2] ss:$0 sm:$0xff]  ;;  %v242_v59 = vld [vmem:[#allocation2 + $0x70] sm:$0xff] }
  0x20   :  { %622 = vmatpush3.bf16.msra.mxu1 %v621_v17  ;;  %641 = vmatprep.subr.bf16.mxu0 %v744_v0  ;;  %v657_v53 = vpack.c.bf16 %v241_v52, %v240_v51  ;;  %v243_v60 = vld [vmem:[#allocation2 + $0x78] sm:$0xff]  ;;  %v322_v62 = vld [vmem:[%s988_s7] sm:$0xff]  ;;  %v323_v63 = vld [vmem:[%s988_s7 + $0x8] sm:$0xff] }
  0x21   :  { %623 = vmatprep.subr.bf16.mxu1 %v744_v0  ;;  %v660_v61 = vpack.c.bf16 %v243_v60, %v242_v59  ;;  %v324_v2 = vld [vmem:[%s988_s7 + $0x10] sm:$0xff]  ;;  %v663_v3 = vpack.c.bf16 %v323_v63, %v322_v62  ;;  %v326_v5 = vld [vmem:[%s988_s7 + $0x20] sm:$0xff]  ;;  %v327_v6 = vld [vmem:[%s988_s7 + $0x28] sm:$0xff] }
  0x22   :  { %v669_v7 = vpack.c.bf16 %v327_v6, %v326_v5  ;;  %v328_v8 = vld [vmem:[%s988_s7 + $0x30] sm:$0xff]  ;;  %v329_v9 = vld [vmem:[%s988_s7 + $0x38] sm:$0xff]  ;;  %v330_v11 = vld [vmem:[%s988_s7 + $0x40] sm:$0xff] }
  0x23   :  { %643 = vmatpush3.bf16.msra.mxu0 %v642_v38  ;;  %v672_v10 = vpack.c.bf16 %v329_v9, %v328_v8  ;;  %v331_v12 = vld [vmem:[%s988_s7 + $0x48] sm:$0xff]  ;;  %v332_v14 = vld [vmem:[%s988_s7 + $0x50] sm:$0xff]  ;;  %v333_v15 = vld [vmem:[%s988_s7 + $0x58] sm:$0xff] }
  0x24   :  { %625 = vmatpush3.bf16.msra.mxu1 %v624_v20  ;;  %644 = vmatprep.subr.bf16.mxu0 %v744_v0  ;;  %v675_v13 = vpack.c.bf16 %v331_v12, %v330_v11  ;;  %v678_v16 = vpack.c.bf16 %v333_v15, %v332_v14  ;;  %v334_v17 = vld [vmem:[%s988_s7 + $0x60] sm:$0xff]  ;;  %v335_v18 = vld [vmem:[%s988_s7 + $0x68] sm:$0xff]  ;;  %v336_v25 = vld [vmem:[%s988_s7 + $0x70] sm:$0xff] }
  0x25   :  { %626 = vmatprep.subr.bf16.mxu1 %v744_v0  ;;  %v681_v19 = vpack.c.bf16 %v335_v18, %v334_v17  ;;  %v433_v20 = vld [vmem:[%s985_s4] ss:$0 sm:$0xff] }
  0x27   :  { %646 = vmatpush3.bf16.msra.mxu0 %v645_v41 }
  0x28   :  { %628 = vmatpush3.bf16.msra.mxu1 %v627_v23  ;;  %647 = vmatprep.subr.bf16.mxu0 %v744_v0 }
  0x29   :  { %629 = vmatprep.subr.bf16.mxu1 %v744_v0 }
  0x2b   :  { %649 = vmatpush3.bf16.msra.mxu0 %v648_v44 }
  0x2c   :  { %631 = vmatpush3.bf16.msra.mxu1 %v630_v26  ;;  %650 = vmatprep.subr.bf16.mxu0 %v744_v0  ;;  %v337_v26 = vld [vmem:[%s988_s7 + $0x78] sm:$0xff] }
  0x2d   :  { %632 = vmatprep.subr.bf16.mxu1 %v744_v0  ;;  %v684_v27 = vpack.c.bf16 %v337_v26, %v336_v25 }
  0x2f   :  { %652 = vmatpush3.bf16.msra.mxu0 %v651_v47 }
  0x30   :  { %634 = vmatpush3.bf16.msra.mxu1 %v633_v29  ;;  %653 = vmatprep.subr.bf16.mxu0 %v744_v0 }
  0x31   :  { %635 = vmatprep.subr.bf16.mxu1 %v744_v0 }
  0x33   :  { %655 = vmatpush3.bf16.msra.mxu0 %v654_v50 }
  0x34   :  { %637 = vmatpush3.bf16.msra.mxu1 %v636_v32  ;;  %656 = vmatprep.subr.bf16.mxu0 %v744_v0  ;;  %v435_v32 = vld [vmem:[%s989_s8] ss:$0 sm:$0xff] }
  0x35   :  { %662 = vmatprep.subr.bf16.mxu1 %v744_v0 }
  0x37   :  { %658 = vmatpush3.bf16.msra.mxu0 %v657_v53 }
  0x38   :  { %659 = vmatprep.subr.bf16.mxu0 %v744_v0 }
  0x3b   :  { %661 = vmatpush3.bf16.msra.mxu0 %v660_v61 }
  0xf1   :  { %v129_v55 = vpop.f32.mrb[0].mxu0 }
  0xf2   :  { %v130_v56 = vadd.f32 %v431_v54, %v129_v55  ;;  %v502_v57 = vpop.f32.mrb[1].mxu0 }
  0xf4   :  { %v133_v58 = vmax.f32 %v130_v56, 0.0 }
  0xf6   :  { %536 = vmatmul.mubr.f32.vlgmr.msra.gmra.mrb[0].mxu1 %v133_v58 }
  0xf7   :  { %605 = vmatprep.mubr.msk.f32.mxu1 %vm745_vm0, %v746_v1  ;;  %v325_v1 = vld [vmem:[%s988_s7 + $0x18] sm:$0xff]  ;;  %664 = vmatpush3.bf16.msra.mxu1 %v663_v3  ;;  %s715_s7 = scalar_lea.vmem %s423_s28, 128 }
  0xf8   :  { %v666_v4 = vpack.c.bf16 %v325_v1, %v324_v2  ;;  %665 = vmatprep.subr.bf16.mxu1 %v744_v0  ;;  %p716_p8 = scmp.ne.s32.totalorder %s423_s28, %s715_s7  ;;  %p721_p10 = scmp.lt.s32.totalorder %s715_s7, %s715_s7 }
  0xfa   :  { %p722_p11 = por %p721_p10, %p720_p9 }
  0xfb   :  { %667 = vmatpush3.bf16.msra.mxu1 %v666_v4 }
  0xfc   :  { %668 = vmatprep.subr.bf16.mxu1 %v744_v0  ;;  %p723_p12 = pnand %p722_p11, %p716_p8 }
  0xff   :  { %670 = vmatpush3.bf16.msra.mxu1 %v669_v7 }
 0x100   :  { %671 = vmatprep.subr.bf16.mxu1 %v744_v0 }
 0x103   :  { %673 = vmatpush3.bf16.msra.mxu1 %v672_v10 }
 0x104   :  { %674 = vmatprep.subr.bf16.mxu1 %v744_v0 }
 0x107   :  { %676 = vmatpush3.bf16.msra.mxu1 %v675_v13 }
 0x108   :  { %677 = vmatprep.subr.bf16.mxu1 %v744_v0 }
 0x10b   :  { %679 = vmatpush3.bf16.msra.mxu1 %v678_v16 }
 0x10c   :  { %680 = vmatprep.subr.bf16.mxu1 %v744_v0 }
 0x10f   :  { %682 = vmatpush3.bf16.msra.mxu1 %v681_v19 }
 0x110   :  { %683 = vmatprep.subr.bf16.mxu1 %v744_v0  ;;  %v434_v0 = vld [vmem:[%s987_s6] ss:$0 sm:$0xff] }
 0x113   :  { %685 = vmatpush3.bf16.msra.mxu1 %v684_v27 }
 0x1c9   :  { %v223_v21 = vpop.f32.mrb[0].mxu1 }
 0x1ca   :  { %v224_v22 = vadd.f32 %v433_v20, %v223_v21  ;;  %v537_v23 = vpop.f32.mrb[1].mxu1 }
 0x1cc   :  { %v227_v24 = vmax.f32 %v224_v22, 0.0 }
 0x1ce   :  { %571 = vmatmul.mubr.f32.vlgmr.msra.gmra.mrb[2].mxu0 %v227_v24 }
 0x2a1   :  { %v317_v28 = vpop.f32.mrb[2].mxu0 }
 0x2a2   :  { %v318_v29 = vadd.f32 %v434_v0, %v317_v28  ;;  %v572_v30 = vpop.f32.mrb[3].mxu0 }
 0x2a4   :  { %v321_v31 = vmax.f32 %v318_v29, 0.0 }
 0x2a6   :  { %606 = vmatmul.mubr.f32.vlgmr.msra.gmra.mrb[2].mxu1 %v321_v31 }
 0x379   :  { %v411_v33 = vpop.f32.mrb[2].mxu1 }
 0x37a   :  { %v412_v34 = vadd.f32 %v435_v32, %v411_v33  ;;  %v607_v35 = vpop.f32.mrb[3].mxu1 }
 0x37c   :  { %415 = vst.msk [vmem:[#allocation5] sm:$0xff] %vm59_vm1, %v412_v34 }
 0x37d   :  { %726 = shalt.err (!%p723_p12)
}
 0x37e   :  { %s727_s30 = scalar_lea.hbm %s990_s9, 128 }
 0x37f   :  { %p728_p13 = scmp.ne.s32.totalorder %s990_s9, %s727_s30  ;;  %p731_p0 = scmp.lt.u32.totalorder %s727_s30, %s990_s9 }
 0x381   :  { %p733_p1 = pnand %p731_p0, %p728_p13 }
 0x383   :  { %736 = shalt.err (!%p733_p1)
}
 0x384   :  { %425 = dma.vmem_to_hbm [thread:$0]  %s423_s28, 128, %s990_s9, [#allocation4]  }
 0x385   :  { %739 = dma.done.wait [#allocation4], 128  }
 0x386   :  { %740 = vsyncadd [#allocation4], 4294967168 }
 0x387   :  { %429 = vsyncpa [#allocation3], 1 }
 0x388   :  { %430 = vsyncpa [#allocation4], 1 }

</bundles_post_ra>
